<compile_context>
chip_gen: v7x
topology: tpu7x:2x2x1
jax: 0.10.0
libtpu: 0.0.40
codegen_flags: <defaults>
</compile_context>

<pallas_src>
import numpy as np
import jax
import jax.numpy as jnp
from jax.experimental import pallas as pl
from jax.experimental.pallas import tpu as pltpu


def _dct_basis():
    # 2D orthonormal DCT-II basis, W[k, i, j] with k = u*8 + v.
    # TODO(synk): deterministic stand-in for models/DCTmtx.npy (same shapes /
    # semantics); deployed model must load the real matrix.
    i = np.arange(8)
    u = np.arange(8)
    c1d = np.cos((2 * i[None, :] + 1) * u[:, None] * np.pi / 16.0)  # [u, i]
    alpha = np.full(8, np.sqrt(2.0 / 8.0))
    alpha[0] = np.sqrt(1.0 / 8.0)
    c1d = alpha[:, None] * c1d
    basis = np.einsum("ui,vj->uvij", c1d, c1d)            # [u, v, i, j]
    return basis.reshape(64, 8, 8).astype(np.float32)      # [k, i, j]


def _dct_kernel(w_ref, x_ref, o_ref):
    # w_ref: (192, 192) folded YCbCr+DCT weight; row = out channel g*64+k,
    #        col = patch element c*64 + i*8 + j.
    # x_ref: (192, tm)  patch-matrix^T block; rows = patch elements,
    #        lanes = spatial positions (lane-dense).
    # o_ref: (192, tm)  output block; rows = out channels -> NCHW directly.
    o_ref[...] = jnp.dot(w_ref[...], x_ref[...],
                         preferred_element_type=jnp.float32)


def _pick_tm(S, N, tm_max=1024):
    """Lane-dense spatial tile: a multiple of 128 (unmasked vst) or the full dim."""
    if S <= 128:
        return S                          # full-dim block satisfies the (8,128) rule
    # Aim for >= ~8 total grid steps (>= 4 per TensorCore on v7x) so the
    # input/output DMAs overlap with compute.
    want_steps = max(1, -(-8 // N))       # ceil(8 / N) spatial tiles per image
    tm = -(-S // want_steps)              # ceil(S / want_steps)
    tm = (tm // 128) * 128                # round down to a lane multiple
    return max(128, min(tm_max, tm))


def dct_forward(x, ycbcr_mat, dct_w, *, tm_max=1024):
    """x: (N, 3, H, W) float32, H % 8 == 0, W % 8 == 0 -> (N, 192, H//8, W//8)."""
    N, C, H, W = x.shape
    assert C == 3 and H % 8 == 0 and W % 8 == 0
    Ho, Wo = H // 8, W // 8
    S = Ho * Wo                                            # spatial positions / image

    # Fold the 1x1 YCbCr conv into the grouped DCT conv (single matmul/block):
    #   w_big[g*64+k, c*64+p] = T[g, c] * Wdct[k, p]
    w64 = jnp.asarray(dct_w, jnp.float32).reshape(64, 64)              # (k, p)
    w_big = jnp.einsum("gc,kp->gkcp",
                       jnp.asarray(ycbcr_mat, jnp.float32),
                       w64).reshape(192, 192)

    # Patch-matrix^T, one HBM pass: (N, 192, S) with
    #   xp[n, c*64 + i*8 + j, ho*Wo + wo] = x[n, c, ho*8+i, wo*8+j]
    # TODO(synk): fuse this transpose into the kernel (stride-8 deinterleave on
    # the XLU) to drop the last non-kernel HBM pass.
    xp = x.reshape(N, 3, Ho, 8, Wo, 8)
    xp = jnp.transpose(xp, (0, 1, 3, 5, 2, 4)).reshape(N, 192, S)

    tm = _pick_tm(S, N, tm_max)
    grid = (N, pl.cdiv(S, tm))

    out = pl.pallas_call(
        _dct_kernel,
        out_shape=jax.ShapeDtypeStruct((N, 192, S), jnp.float32),
        grid=grid,
        in_specs=[
            # Constant-index weight block: ~147 KiB, stays resident across steps.
            pl.BlockSpec((192, 192), lambda n, m: (0, 0)),
            pl.BlockSpec((None, 192, tm), lambda n, m: (n, 0, m)),
        ],
        out_specs=pl.BlockSpec((None, 192, tm), lambda n, m: (n, 0, m)),
        compiler_params=pltpu.CompilerParams(
            dimension_semantics=("parallel", "parallel")),
        cost_estimate=pl.CostEstimate(
            flops=2 * N * S * 192 * 192,
            transcendentals=0,
            bytes_accessed=2 * N * 192 * S * 4 + 192 * 192 * 4),
    )(w_big, xp)

    return out.reshape(N, 192, Ho, Wo)                     # free reshape (NCHW)


if __name__ == "__main__":
    key = jax.random.PRNGKey(0)
    N, C, H, W = 2, 3, 16, 16
    x = jax.random.uniform(key, (N, C, H, W), dtype=jnp.float32)

    ycbcr_np = np.array(
        [[0.299, 0.587, 0.114],
         [-0.169, -0.331, 0.5],
         [0.5, -0.419, -0.081]], dtype=np.float32)
    dct_w = _dct_basis()                          # (64, 8, 8), k = u*8 + v

    out = dct_forward(x, jnp.asarray(ycbcr_np), dct_w)
    out = jax.block_until_ready(out)

    # Pure-JAX reference (same math as the PyTorch module's forward).
    ycbcr = jnp.einsum("gc,nchw->nghw", jnp.asarray(ycbcr_np), x)
    Ho, Wo = H // 8, W // 8
    patches = ycbcr.reshape(N, 3, Ho, 8, Wo, 8).transpose(0, 1, 2, 4, 3, 5)
    patches = patches.reshape(N, 3, Ho, Wo, 64)
    ref = jnp.einsum("ngHWp,kp->ngkHW", patches,
                     jnp.asarray(dct_w.reshape(64, 64)))
    ref = ref.reshape(N, 192, Ho, Wo)

    assert out.shape == (N, 192, Ho, Wo)
    assert jnp.allclose(out, ref, atol=1e-4, rtol=1e-4)
    print("KERNEL_OK")
</pallas_src>

<mosaic_0001>
module attributes {stable_mosaic.version = 11 : i64} {
  func.func @_dct_kernel(%arg0: i32, %arg1: i32, %arg2: memref<192x192xf32, #tpu.memory_space<vmem>>, %arg3: memref<1x192x4xf32, #tpu.memory_space<vmem>>, %arg4: memref<1x192x4xf32, #tpu.memory_space<vmem>>) attributes {dimension_semantics = [#tpu.dimension_semantics<parallel>, #tpu.dimension_semantics<parallel>], iteration_bounds = array<i64: 2, 1>, scalar_prefetch = 0 : i64, scratch_operands = 0 : i64, tpu.core_type = #tpu.core_type<tc>, window_params = [{pipeline_mode = #tpu.pipeline_mode<synchronous>, transform_indices = @transform_0, window_bounds = array<i64: 192, 192>}, {transform_indices = @transform_1, window_bounds = array<i64: 1, 192, 4>}, {transform_indices = @transform_2, window_bounds = array<i64: 1, 192, 4>}]} {
    %c0 = arith.constant 0 : index
    %c0_0 = arith.constant 0 : index
    %0 = vector.load %arg2[%c0, %c0_0] : memref<192x192xf32, #tpu.memory_space<vmem>>, vector<192x192xf32>
    %c0_1 = arith.constant 0 : index
    %c0_2 = arith.constant 0 : index
    %c0_3 = arith.constant 0 : index
    %1 = vector.load %arg3[%c0_1, %c0_2, %c0_3] : memref<1x192x4xf32, #tpu.memory_space<vmem>>, vector<1x192x4xf32>
    %2 = vector.shape_cast %1 : vector<1x192x4xf32> to vector<192x4xf32>
    %cst = arith.constant dense<0.000000e+00> : vector<192x4xf32>
    %3 = tpu.matmul %0, %2, %cst {dimension_numbers = #tpu.dot_dimension_numbers<[1], [0], [0], [1], [0, 0, 1, 1], [], []>} : vector<192x192xf32>, vector<192x4xf32>, vector<192x4xf32> -> vector<192x4xf32>
    %c0_4 = arith.constant 0 : index
    %c0_5 = arith.constant 0 : index
    %c0_6 = arith.constant 0 : index
    %4 = vector.load %arg4[%c0_4, %c0_5, %c0_6] : memref<1x192x4xf32, #tpu.memory_space<vmem>>, vector<1x192x4xf32>
    %5 = vector.shape_cast %4 : vector<1x192x4xf32> to vector<192x4xf32>
    %6 = vector.shape_cast %3 : vector<192x4xf32> to vector<1x192x4xf32>
    tpu.vector_store %arg4[%c0_4, %c0_5, %c0_6], %6 {strides = array<i32>} : memref<1x192x4xf32, #tpu.memory_space<vmem>>, vector<1x192x4xf32>,
    return
  }
  func.func @transform_0(%arg0: i32, %arg1: i32) -> (i32, i32) {
    %c0_i32 = arith.constant 0 : i32
    %c0_i32_0 = arith.constant 0 : i32
    %c0_i32_1 = arith.constant 0 : i32
    return %c0_i32, %c0_i32_0 : i32, i32
  }
  func.func @transform_1(%arg0: i32, %arg1: i32) -> (i32, i32, i32) {
    %c0_i32 = arith.constant 0 : i32
    %c0_i32_0 = arith.constant 0 : i32
    return %arg0, %c0_i32, %arg1 : i32, i32, i32
  }
  func.func @transform_2(%arg0: i32, %arg1: i32) -> (i32, i32, i32) {
    %c0_i32 = arith.constant 0 : i32
    %c0_i32_0 = arith.constant 0 : i32
    return %arg0, %c0_i32, %arg1 : i32, i32, i32
  }
}

</mosaic_0001>

<bundles_post_ra>
// kernel: tpu_custom_call.1
= control target key start
LH: loop header
LB: loop body
LE: loop exit
PB: predicated region body
PF: predicated region fallthrough
CT: control target
= control target key end

     0   :  { %s772_s9 = smov 0   ;;  %s774_s10 = smov 0   ;;  %s1080_s0 = inlined_call_operand.vmem [shape: f32[192,192], index: 0, kind: input, shape index: {}]   ;;  %s1081_s1 = inlined_call_operand.vmem [shape: f32[2,192,4], index: 1, kind: input, shape index: {}]   ;;  %s1082_s2 = inlined_call_operand.vmem [shape: f32[2,192,4], index: 2, kind: output, shape index: {}]  }
   0x1   :  { %s776_s11 = smov 0  }
   0x2 LB: > { %s24_s12 = sadd.s32 1, %s750_s10  ;;  %p617_p0 = scmp.ge.s32.totalorder %s754_s11, 1  ;;  %s754_s11 = sphi %s776_s11, %s12_s11   ;;  %s750_s10 = sphi %s774_s10, %s1084_s10   ;;  %s746_s9 = sphi %s772_s9, %s1083_s9  }
   0x3   : > { %p26_p1 = scmp.ge.s32.totalorder %s24_s12, 2  ;;  %p131_p2 = scmp.lt.s32.totalorder %s754_s11, 3 }
   0x5   : > { %s1086_s12 = smov (%p26_p1, %s24_s12), 0  ;;  %p132_p3 = pnand %p617_p0, %p131_p2 }
   0x6   : > { %p159_p4 = scmp.lt.s32.totalorder (!%p132_p3), %s746_s9, 1  ;;  %v176_v0 = vld [vmem:[%s1080_s0 + $0x8] sm:$0xff] (!%p132_p3)  ;;  %vm247_vm0 = vcmask (!%p132_p3), 523264   ;;  %v756_v2 = vmov (!%p132_p3), 0.0|0.0   ;;  %v175_v39 = vld [vmem:[%s1080_s0] sm:$0xff] (!%p132_p3)  ;;  %v178_v41 = vld [vmem:[%s1080_s0 + $0x18] sm:$0xff] (!%p132_p3) }
   0x7   : > { %135 = sbr.rel (%p132_p3) target bundleno = 325 (0x145), region = 28  ;;  %v200_v1 = vld [vmem:[%s1080_s0 + $0xc8] sm:$0xff] (!%p132_p3)  ;;  %646 = vmatprep.subr.bf16.mxu0 (!%p132_p3), %v756_v2  ;;  %682 = vmatprep.subr.bf16.mxu1 (!%p132_p3), %v756_v2  ;;  %v199_v40 = vld [vmem:[%s1080_s0 + $0xc0] sm:$0xff] (!%p132_p3)  ;;  %v202_v42 = vld [vmem:[%s1080_s0 + $0xd8] sm:$0xff] (!%p132_p3)  ;;  %vm505_vm1 = vcmask (!%p132_p3), 31744  }
   0x8   : > { %620 = vmatprep.mubr.msk.f32.mxu0 (!%p132_p3), %vm247_vm0, %v176_v0  ;;  %632 = vmatprep.mubr.msk.f32.mxu1 (!%p132_p3), %vm247_vm0, %v200_v1  ;;  %v177_v43 = vld [vmem:[%s1080_s0 + $0x10] sm:$0xff] (!%p132_p3)  ;;  %v180_v45 = vld [vmem:[%s1080_s0 + $0x28] sm:$0xff] (!%p132_p3)  ;;  %v179_v47 = vld [vmem:[%s1080_s0 + $0x20] sm:$0xff] (!%p132_p3) }
   0x9   : > { %v201_v44 = vld [vmem:[%s1080_s0 + $0xd0] sm:$0xff] (!%p132_p3)  ;;  %v204_v46 = vld [vmem:[%s1080_s0 + $0xe8] sm:$0xff] (!%p132_p3)  ;;  %v203_v48 = vld [vmem:[%s1080_s0 + $0xe0] sm:$0xff] (!%p132_p3) }
   0xa   : > { %v182_v49 = vld [vmem:[%s1080_s0 + $0x38] sm:$0xff] (!%p132_p3)  ;;  %v181_v51 = vld [vmem:[%s1080_s0 + $0x30] sm:$0xff] (!%p132_p3)  ;;  %v184_v53 = vld [vmem:[%s1080_s0 + $0x48] sm:$0xff] (!%p132_p3) }
   0xb   : > { %v206_v50 = vld [vmem:[%s1080_s0 + $0xf8] sm:$0xff] (!%p132_p3)  ;;  %v205_v52 = vld [vmem:[%s1080_s0 + $0xf0] sm:$0xff] (!%p132_p3)  ;;  %v208_v54 = vld [vmem:[%s1080_s0 + $0x108] sm:$0xff] (!%p132_p3) }
   0xc   : > { %v183_v55 = vld [vmem:[%s1080_s0 + $0x40] sm:$0xff] (!%p132_p3)  ;;  %v186_v57 = vld [vmem:[%s1080_s0 + $0x58] sm:$0xff] (!%p132_p3)  ;;  %v185_v59 = vld [vmem:[%s1080_s0 + $0x50] sm:$0xff] (!%p132_p3) }
   0xd   : > { %v207_v56 = vld [vmem:[%s1080_s0 + $0x100] sm:$0xff] (!%p132_p3)  ;;  %v210_v58 = vld [vmem:[%s1080_s0 + $0x118] sm:$0xff] (!%p132_p3)  ;;  %v209_v60 = vld [vmem:[%s1080_s0 + $0x110] sm:$0xff] (!%p132_p3) }
   0xe   : > { %s1088_s9 = smov (!%p159_p4, %s746_s9), 1  ;;  %v188_v61 = vld [vmem:[%s1080_s0 + $0x68] sm:$0xff]  ;;  %v187_v63 = vld [vmem:[%s1080_s0 + $0x60] sm:$0xff]  ;;  %v190_v1 = vld [vmem:[%s1080_s0 + $0x78] sm:$0xff] }
   0xf   : > { %s706_s17 = smul.u32 192, %s1088_s9  ;;  %v212_v62 = vld [vmem:[%s1080_s0 + $0x128] sm:$0xff]  ;;  %v211_v0 = vld [vmem:[%s1080_s0 + $0x120] sm:$0xff] }
  0x11   : > { %s808_s20 = scalar_lea.vmem %s1081_s1, %s706_s17  ;;  %s1021_s23 = scalar_lea.vmem %s1082_s2, %s706_s17 }
  0x12   : > { %v223_v3 = vld [vmem:[%s808_s20] sm:$0xff]  ;;  %v224_v4 = vld [vmem:[%s808_s20 + $0x8] sm:$0xff]  ;;  %v225_v5 = vld [vmem:[%s808_s20 + $0x10] sm:$0xff] }
  0x13   : > { %v647_v6 = vpack.c.bf16 %v224_v4, %v223_v3  ;;  %v226_v7 = vld [vmem:[%s808_s20 + $0x18] sm:$0xff]  ;;  %v227_v9 = vld [vmem:[%s808_s20 + $0x20] sm:$0xff]  ;;  %v228_v10 = vld [vmem:[%s808_s20 + $0x28] sm:$0xff] }
  0x14   : > { %v650_v8 = vpack.c.bf16 %v226_v7, %v225_v5  ;;  %v653_v11 = vpack.c.bf16 %v228_v10, %v227_v9  ;;  %v229_v12 = vld [vmem:[%s808_s20 + $0x30] sm:$0xff]  ;;  %v230_v13 = vld [vmem:[%s808_s20 + $0x38] sm:$0xff]  ;;  %v231_v15 = vld [vmem:[%s808_s20 + $0x40] sm:$0xff] }
  0x15   : > { %648 = vmatpush1.bf16.msra.mxu0 %v647_v6  ;;  %694 = vmatpush1.bf16.msra.mxu1 %v647_v6  ;;  %v656_v14 = vpack.c.bf16 %v230_v13, %v229_v12  ;;  %v232_v16 = vld [vmem:[%s808_s20 + $0x48] sm:$0xff]  ;;  %v233_v18 = vld [vmem:[%s808_s20 + $0x50] sm:$0xff]  ;;  %v234_v19 = vld [vmem:[%s808_s20 + $0x58] sm:$0xff] }
  0x16   : > { %649 = vmatprep.subr.bf16.mxu0 %v756_v2  ;;  %683 = vmatprep.subr.bf16.mxu1 %v756_v2  ;;  %v659_v17 = vpack.c.bf16 %v232_v16, %v231_v15  ;;  %v662_v20 = vpack.c.bf16 %v234_v19, %v233_v18  ;;  %v235_v21 = vld [vmem:[%s808_s20 + $0x60] sm:$0xff]  ;;  %v236_v22 = vld [vmem:[%s808_s20 + $0x68] sm:$0xff]  ;;  %v237_v24 = vld [vmem:[%s808_s20 + $0x70] sm:$0xff] }
  0x17   : > { %v665_v23 = vpack.c.bf16 %v236_v22, %v235_v21  ;;  %v238_v25 = vld [vmem:[%s808_s20 + $0x78] sm:$0xff]  ;;  %v239_v27 = vld [vmem:[%s808_s20 + $0x80] sm:$0xff]  ;;  %v240_v28 = vld [vmem:[%s808_s20 + $0x88] sm:$0xff] }
  0x18   : > { %v668_v26 = vpack.c.bf16 %v238_v25, %v237_v24  ;;  %v671_v29 = vpack.c.bf16 %v240_v28, %v239_v27  ;;  %v241_v30 = vld [vmem:[%s808_s20 + $0x90] sm:$0xff]  ;;  %v242_v31 = vld [vmem:[%s808_s20 + $0x98] sm:$0xff]  ;;  %v243_v33 = vld [vmem:[%s808_s20 + $0xa0] sm:$0xff] }
  0x19   : > { %651 = vmatpush1.bf16.msra.mxu0 %v650_v8  ;;  %695 = vmatpush1.bf16.msra.mxu1 %v650_v8  ;;  %v674_v32 = vpack.c.bf16 %v242_v31, %v241_v30  ;;  %v244_v34 = vld [vmem:[%s808_s20 + $0xa8] sm:$0xff]  ;;  %v245_v36 = vld [vmem:[%s808_s20 + $0xb0] sm:$0xff]  ;;  %v246_v37 = vld [vmem:[%s808_s20 + $0xb8] sm:$0xff] }
  0x1a   : > { %652 = vmatprep.subr.bf16.mxu0 %v756_v2  ;;  %684 = vmatprep.subr.bf16.mxu1 %v756_v2  ;;  %v677_v35 = vpack.c.bf16 %v244_v34, %v243_v33  ;;  %v680_v38 = vpack.c.bf16 %v246_v37, %v245_v36  ;;  %v189_v3 = vld [vmem:[%s1080_s0 + $0x70] sm:$0xff]  ;;  %v192_v5 = vld [vmem:[%s1080_s0 + $0x88] sm:$0xff]  ;;  %v191_v7 = vld [vmem:[%s1080_s0 + $0x80] sm:$0xff] }
  0x1b   : > { %v213_v4 = vld [vmem:[%s1080_s0 + $0x130] sm:$0xff]  ;;  %v216_v6 = vld [vmem:[%s1080_s0 + $0x148] sm:$0xff]  ;;  %v215_v8 = vld [vmem:[%s1080_s0 + $0x140] sm:$0xff] }
  0x1c   : > { %v194_v9 = vld [vmem:[%s1080_s0 + $0x98] sm:$0xff]  ;;  %v217_v12 = vld [vmem:[%s1080_s0 + $0x150] sm:$0xff]  ;;  %v196_v13 = vld [vmem:[%s1080_s0 + $0xa8] sm:$0xff] }
  0x1d   : > { %654 = vmatpush1.bf16.msra.mxu0 %v653_v11  ;;  %696 = vmatpush1.bf16.msra.mxu1 %v653_v11  ;;  %v218_v10 = vld [vmem:[%s1080_s0 + $0x158] sm:$0xff]  ;;  %v193_v11 = vld [vmem:[%s1080_s0 + $0x90] sm:$0xff]  ;;  %v195_v15 = vld [vmem:[%s1080_s0 + $0xa0] sm:$0xff] }
  0x1e   : > { %655 = vmatprep.subr.bf16.mxu0 %v756_v2  ;;  %685 = vmatprep.subr.bf16.mxu1 %v756_v2  ;;  %v219_v16 = vld [vmem:[%s1080_s0 + $0x160] sm:$0xff]  ;;  %v222_v18 = vld [vmem:[%s1080_s0 + $0x178] sm:$0xff]  ;;  %v197_v19 = vld [vmem:[%s1080_s0 + $0xb0] sm:$0xff] }
  0x21   : > { %657 = vmatpush1.bf16.msra.mxu0 %v656_v14  ;;  %697 = vmatpush1.bf16.msra.mxu1 %v656_v14  ;;  %v220_v14 = vld [vmem:[%s1080_s0 + $0x168] sm:$0xff] }
  0x22   : > { %658 = vmatprep.subr.bf16.mxu0 %v756_v2  ;;  %686 = vmatprep.subr.bf16.mxu1 %v756_v2 }
  0x25   : > { %660 = vmatpush1.bf16.msra.mxu0 %v659_v17  ;;  %698 = vmatpush1.bf16.msra.mxu1 %v659_v17  ;;  %v198_v17 = vld [vmem:[%s1080_s0 + $0xb8] sm:$0xff] }
  0x26   : > { %661 = vmatprep.subr.bf16.mxu0 %v756_v2  ;;  %687 = vmatprep.subr.bf16.mxu1 %v756_v2 }
  0x29   : > { %663 = vmatpush1.bf16.msra.mxu0 %v662_v20  ;;  %699 = vmatpush1.bf16.msra.mxu1 %v662_v20  ;;  %v221_v20 = vld [vmem:[%s1080_s0 + $0x170] sm:$0xff] }
  0x2a   : > { %664 = vmatprep.subr.bf16.mxu0 %v756_v2  ;;  %688 = vmatprep.subr.bf16.mxu1 %v756_v2 }
  0x2d   : > { %666 = vmatpush1.bf16.msra.mxu0 %v665_v23  ;;  %700 = vmatpush1.bf16.msra.mxu1 %v665_v23 }
  0x2e   : > { %667 = vmatprep.subr.bf16.mxu0 %v756_v2  ;;  %689 = vmatprep.subr.bf16.mxu1 %v756_v2 }
  0x31   : > { %669 = vmatpush1.bf16.msra.mxu0 %v668_v26  ;;  %701 = vmatpush1.bf16.msra.mxu1 %v668_v26 }
  0x32   : > { %670 = vmatprep.subr.bf16.mxu0 %v756_v2  ;;  %690 = vmatprep.subr.bf16.mxu1 %v756_v2 }
  0x35   : > { %672 = vmatpush1.bf16.msra.mxu0 %v671_v29  ;;  %702 = vmatpush1.bf16.msra.mxu1 %v671_v29 }
  0x36   : > { %673 = vmatprep.subr.bf16.mxu0 %v756_v2  ;;  %691 = vmatprep.subr.bf16.mxu1 %v756_v2 }
  0x39   : > { %675 = vmatpush1.bf16.msra.mxu0 %v674_v32  ;;  %703 = vmatpush1.bf16.msra.mxu1 %v674_v32 }
  0x3a   : > { %676 = vmatprep.subr.bf16.mxu0 %v756_v2  ;;  %692 = vmatprep.subr.bf16.mxu1 %v756_v2 }
  0x3d   : > { %678 = vmatpush1.bf16.msra.mxu0 %v677_v35  ;;  %704 = vmatpush1.bf16.msra.mxu1 %v677_v35 }
  0x3e   : > { %679 = vmatprep.subr.bf16.mxu0 %v756_v2  ;;  %693 = vmatprep.subr.bf16.mxu1 %v756_v2  ;;  %v214_v2 = vld [vmem:[%s1080_s0 + $0x138] sm:$0xff] }
  0x41   : > { %681 = vmatpush1.bf16.msra.mxu0 %v680_v38  ;;  %705 = vmatpush1.bf16.msra.mxu1 %v680_v38 }
  0x44   : > { %385 = vmatmul.mubr.f32.vlgmr.msra.gmra.mrb[0].mxu0 %v175_v39  ;;  %445 = vmatmul.mubr.f32.vlgmr.msra.gmra.mrb[0].mxu1 %v199_v40 }
  0x45   : > { %621 = vmatprep.mubr.msk.f32.mxu0 %vm247_vm0, %v178_v41  ;;  %633 = vmatprep.mubr.msk.f32.mxu1 %vm247_vm0, %v202_v42 }
  0x48   : > { %390 = vmatmul.mubr.f32.gmra.mrb[2].mxu0 %v177_v43  ;;  %450 = vmatmul.mubr.f32.gmra.mrb[2].mxu1 %v201_v44 }
  0x49   : > { %622 = vmatprep.mubr.msk.f32.mxu0 %vm247_vm0, %v180_v45  ;;  %634 = vmatprep.mubr.msk.f32.mxu1 %vm247_vm0, %v204_v46 }
  0x4c   : > { %395 = vmatmul.mubr.f32.gmra.mrb[4].mxu0 %v179_v47  ;;  %455 = vmatmul.mubr.f32.gmra.mrb[4].mxu1 %v203_v48 }
  0x4d   : > { %623 = vmatprep.mubr.msk.f32.mxu0 %vm247_vm0, %v182_v49  ;;  %635 = vmatprep.mubr.msk.f32.mxu1 %vm247_vm0, %v206_v50 }
  0x50   : > { %400 = vmatmul.mubr.f32.gmra.mrb[6].mxu0 %v181_v51  ;;  %460 = vmatmul.mubr.f32.gmra.mrb[6].mxu1 %v205_v52 }
  0x51   : > { %624 = vmatprep.mubr.msk.f32.mxu0 %vm247_vm0, %v184_v53  ;;  %636 = vmatprep.mubr.msk.f32.mxu1 %vm247_vm0, %v208_v54 }
  0x54   : > { %405 = vmatmul.mubr.f32.gmra.mrb[8].mxu0 %v183_v55  ;;  %465 = vmatmul.mubr.f32.gmra.mrb[8].mxu1 %v207_v56 }
  0x55   : > { %625 = vmatprep.mubr.msk.f32.mxu0 %vm247_vm0, %v186_v57  ;;  %637 = vmatprep.mubr.msk.f32.mxu1 %vm247_vm0, %v210_v58 }
  0x58   : > { %410 = vmatmul.mubr.f32.gmra.mrb[10].mxu0 %v185_v59  ;;  %470 = vmatmul.mubr.f32.gmra.mrb[10].mxu1 %v209_v60 }
  0x59   : > { %626 = vmatprep.mubr.msk.f32.mxu0 %vm247_vm0, %v188_v61  ;;  %638 = vmatprep.mubr.msk.f32.mxu1 %vm247_vm0, %v212_v62 }
  0x5c   : > { %415 = vmatmul.mubr.f32.gmra.mrb[12].mxu0 %v187_v63  ;;  %475 = vmatmul.mubr.f32.gmra.mrb[12].mxu1 %v211_v0 }
  0x5d   : > { %627 = vmatprep.mubr.msk.f32.mxu0 %vm247_vm0, %v190_v1  ;;  %639 = vmatprep.mubr.msk.f32.mxu1 %vm247_vm0, %v214_v2 }
  0x60   : > { %420 = vmatmul.mubr.f32.gmra.mrb[14].mxu0 %v189_v3  ;;  %480 = vmatmul.mubr.f32.gmra.mrb[14].mxu1 %v213_v4 }
  0x61   : > { %628 = vmatprep.mubr.msk.f32.mxu0 %vm247_vm0, %v192_v5  ;;  %640 = vmatprep.mubr.msk.f32.mxu1 %vm247_vm0, %v216_v6 }
  0x64   : > { %425 = vmatmul.mubr.f32.gmra.mrb[16].mxu0 %v191_v7  ;;  %485 = vmatmul.mubr.f32.gmra.mrb[16].mxu1 %v215_v8 }
  0x65   : > { %629 = vmatprep.mubr.msk.f32.mxu0 %vm247_vm0, %v194_v9  ;;  %641 = vmatprep.mubr.msk.f32.mxu1 %vm247_vm0, %v218_v10 }
  0x68   : > { %430 = vmatmul.mubr.f32.gmra.mrb[18].mxu0 %v193_v11  ;;  %490 = vmatmul.mubr.f32.gmra.mrb[18].mxu1 %v217_v12 }
  0x69   : > { %630 = vmatprep.mubr.msk.f32.mxu0 %vm247_vm0, %v196_v13  ;;  %642 = vmatprep.mubr.msk.f32.mxu1 %vm247_vm0, %v220_v14 }
  0x6c   : > { %435 = vmatmul.mubr.f32.gmra.mrb[20].mxu0 %v195_v15  ;;  %495 = vmatmul.mubr.f32.gmra.mrb[20].mxu1 %v219_v16 }
  0x6d   : > { %631 = vmatprep.mubr.msk.f32.mxu0 %vm247_vm0, %v198_v17  ;;  %643 = vmatprep.mubr.msk.f32.mxu1 %vm247_vm0, %v222_v18 }
  0x70   : > { %440 = vmatmul.mubr.f32.gmra.mrb[22].mxu0 %v197_v19  ;;  %500 = vmatmul.mubr.f32.gmra.mrb[22].mxu1 %v221_v20 }
 0x117   : > { %v386_v21 = vpop.f32.mrb[0].mxu0  ;;  %v446_v22 = vpop.f32.mrb[0].mxu1 }
 0x118   : > { %506 = vst.msk [vmem:[%s1021_s23] sm:$0xff] %vm505_vm1, %v386_v21  ;;  %518 = vst.msk [vmem:[%s1021_s23 + $0x60] sm:$0xff] %vm505_vm1, %v446_v22  ;;  %v388_v23 = vpop.f32.mrb[1].mxu0  ;;  %v448_v24 = vpop.f32.mrb[1].mxu1 }
 0x11b   : > { %v391_v25 = vpop.f32.mrb[2].mxu0  ;;  %v451_v26 = vpop.f32.mrb[2].mxu1 }
 0x11c   : > { %507 = vst.msk [vmem:[%s1021_s23 + $0x8] sm:$0xff] %vm505_vm1, %v391_v25  ;;  %519 = vst.msk [vmem:[%s1021_s23 + $0x68] sm:$0xff] %vm505_vm1, %v451_v26  ;;  %v393_v27 = vpop.f32.mrb[3].mxu0  ;;  %v453_v28 = vpop.f32.mrb[3].mxu1 }
 0x11f   : > { %v396_v29 = vpop.f32.mrb[4].mxu0  ;;  %v456_v30 = vpop.f32.mrb[4].mxu1 }
 0x120   : > { %508 = vst.msk [vmem:[%s1021_s23 + $0x10] sm:$0xff] %vm505_vm1, %v396_v29  ;;  %520 = vst.msk [vmem:[%s1021_s23 + $0x70] sm:$0xff] %vm505_vm1, %v456_v30  ;;  %v398_v31 = vpop.f32.mrb[5].mxu0  ;;  %v458_v32 = vpop.f32.mrb[5].mxu1 }
 0x123   : > { %v401_v33 = vpop.f32.mrb[6].mxu0  ;;  %v461_v34 = vpop.f32.mrb[6].mxu1 }
 0x124   : > { %509 = vst.msk [vmem:[%s1021_s23 + $0x18] sm:$0xff] %vm505_vm1, %v401_v33  ;;  %521 = vst.msk [vmem:[%s1021_s23 + $0x78] sm:$0xff] %vm505_vm1, %v461_v34  ;;  %v403_v35 = vpop.f32.mrb[7].mxu0  ;;  %v463_v36 = vpop.f32.mrb[7].mxu1 }
 0x127   : > { %v406_v37 = vpop.f32.mrb[8].mxu0  ;;  %v466_v38 = vpop.f32.mrb[8].mxu1 }
 0x128   : > { %510 = vst.msk [vmem:[%s1021_s23 + $0x20] sm:$0xff] %vm505_vm1, %v406_v37  ;;  %522 = vst.msk [vmem:[%s1021_s23 + $0x80] sm:$0xff] %vm505_vm1, %v466_v38  ;;  %v408_v39 = vpop.f32.mrb[9].mxu0  ;;  %v468_v40 = vpop.f32.mrb[9].mxu1 }
 0x12b   : > { %v411_v41 = vpop.f32.mrb[10].mxu0  ;;  %v471_v42 = vpop.f32.mrb[10].mxu1 }
 0x12c   : > { %511 = vst.msk [vmem:[%s1021_s23 + $0x28] sm:$0xff] %vm505_vm1, %v411_v41  ;;  %523 = vst.msk [vmem:[%s1021_s23 + $0x88] sm:$0xff] %vm505_vm1, %v471_v42  ;;  %v413_v43 = vpop.f32.mrb[11].mxu0  ;;  %v473_v44 = vpop.f32.mrb[11].mxu1 }
 0x12f   : > { %v416_v45 = vpop.f32.mrb[12].mxu0  ;;  %v476_v46 = vpop.f32.mrb[12].mxu1 }
 0x130   : > { %512 = vst.msk [vmem:[%s1021_s23 + $0x30] sm:$0xff] %vm505_vm1, %v416_v45  ;;  %524 = vst.msk [vmem:[%s1021_s23 + $0x90] sm:$0xff] %vm505_vm1, %v476_v46  ;;  %v418_v47 = vpop.f32.mrb[13].mxu0  ;;  %v478_v48 = vpop.f32.mrb[13].mxu1 }
 0x133   : > { %v421_v49 = vpop.f32.mrb[14].mxu0  ;;  %v481_v50 = vpop.f32.mrb[14].mxu1 }
 0x134   : > { %513 = vst.msk [vmem:[%s1021_s23 + $0x38] sm:$0xff] %vm505_vm1, %v421_v49  ;;  %525 = vst.msk [vmem:[%s1021_s23 + $0x98] sm:$0xff] %vm505_vm1, %v481_v50  ;;  %v423_v51 = vpop.f32.mrb[15].mxu0  ;;  %v483_v52 = vpop.f32.mrb[15].mxu1 }
 0x137   : > { %v426_v53 = vpop.f32.mrb[16].mxu0  ;;  %v486_v54 = vpop.f32.mrb[16].mxu1 }
 0x138   : > { %514 = vst.msk [vmem:[%s1021_s23 + $0x40] sm:$0xff] %vm505_vm1, %v426_v53  ;;  %526 = vst.msk [vmem:[%s1021_s23 + $0xa0] sm:$0xff] %vm505_vm1, %v486_v54  ;;  %v428_v55 = vpop.f32.mrb[17].mxu0  ;;  %v488_v56 = vpop.f32.mrb[17].mxu1 }
 0x13b   : > { %v431_v57 = vpop.f32.mrb[18].mxu0  ;;  %v491_v58 = vpop.f32.mrb[18].mxu1 }
 0x13c   : > { %515 = vst.msk [vmem:[%s1021_s23 + $0x48] sm:$0xff] %vm505_vm1, %v431_v57  ;;  %527 = vst.msk [vmem:[%s1021_s23 + $0xa8] sm:$0xff] %vm505_vm1, %v491_v58  ;;  %v433_v59 = vpop.f32.mrb[19].mxu0  ;;  %v493_v60 = vpop.f32.mrb[19].mxu1 }
 0x13f   : > { %v436_v61 = vpop.f32.mrb[20].mxu0  ;;  %v496_v62 = vpop.f32.mrb[20].mxu1 }
 0x140   : > { %516 = vst.msk [vmem:[%s1021_s23 + $0x50] sm:$0xff] %vm505_vm1, %v436_v61  ;;  %528 = vst.msk [vmem:[%s1021_s23 + $0xb0] sm:$0xff] %vm505_vm1, %v496_v62  ;;  %v438_v63 = vpop.f32.mrb[21].mxu0  ;;  %v498_v0 = vpop.f32.mrb[21].mxu1 }
 0x143   : > { %v441_v1 = vpop.f32.mrb[22].mxu0  ;;  %v501_v2 = vpop.f32.mrb[22].mxu1 }
 0x144   : > { %517 = vst.msk [vmem:[%s1021_s23 + $0x58] sm:$0xff] %vm505_vm1, %v441_v1  ;;  %529 = vst.msk [vmem:[%s1021_s23 + $0xb8] sm:$0xff] %vm505_vm1, %v501_v2  ;;  %v443_v3 = vpop.f32.mrb[23].mxu0  ;;  %v503_v4 = vpop.f32.mrb[23].mxu1 }
 0x145 PF: > { %s12_s11 = sadd.s32 1, %s754_s11   ;;  %s1083_s9 = smov %s750_s10 }
 0x146   : > { %p9_p5 = scmp.ge.s32.totalorder %s12_s11, 4   ;;  %s1084_s10 = smov %s1086_s12 }
 0x148   :  { %11 = sbr.rel (!%p9_p5) target bundleno = 2 (0x2), region = 58 }

</bundles_post_ra>
